<compile_context>
chip_gen: v6e
topology: v6e:2x2x1
jax: 0.10.0
libtpu: 0.0.40
codegen_flags: <defaults>
</compile_context>

<pallas_src>
import functools
import math

import jax
import jax.numpy as jnp
from jax.experimental import pallas as pl
from jax.experimental.pallas import tpu as pltpu

# Tiling policy (see header):
_VMEM_TILE_BUDGET = 12 * 1024 * 1024   # accounted per-tile working set (in/out x2,
                                       # u32 bits, f32 temps) — well under scoped limit
_X_TILE_BYTES = 4 * 1024 * 1024        # cap on raw x bytes per tile (roofline-saturating)
_VMEM_LIMIT_BYTES = 32 * 1024 * 1024   # explicit scoped VMEM (v5e default is only 16 MiB)
_MIN_GRID_STEPS = 8                    # keep pipelining + v7x megacore busy
_SEED_MIX = -1640531527                # 0x9E3779B9 as int32 (odd), per-block seed mixing


def _gelu(x):
    # tanh-approx GELU (matches xformers' triton gelu kernel), computed in f32
    c = math.sqrt(2.0 / math.pi)
    return 0.5 * x * (1.0 + jnp.tanh(c * (x + 0.044715 * x * x * x)))


def _apply_activation(x, activation):
    if activation is None:
        return x
    if activation == "gelu":
        return _gelu(x)
    raise ValueError(f"unsupported activation: {activation}")


def _choose_tiles(M, N, io_bytes, dropout):
    """Pick (bm, bn).  Prefer a full-N row block (1-D grid); tile N only if huge."""
    # Per-element VMEM while a tile is live: double-buffered input + output
    # streams (2 * 2 * io_bytes), the uint32 random-bits intermediate when
    # dropout is active (4 B), plus ~8 B headroom for f32 compute temporaries
    # and the keep mask.
    per_elem = 4 * io_bytes + (4 if dropout else 0) + 8
    # Align row blocks to the packed-sublane count of the I/O dtype.
    row_align = max(8, 32 // io_bytes)   # 8 for f32, 16 for bf16, 32 for i8/fp8

    per_row = N * per_elem
    if per_row * row_align <= _VMEM_TILE_BUDGET:
        # 1-D grid over full-N row blocks: lane-dense stores, bias block fetched
        # once (constant block index), fewest DMAs per byte.
        bm = _VMEM_TILE_BUDGET // per_row
        bm = min(bm, max(row_align, _X_TILE_BYTES // max(1, N * io_bytes)))
        # Cap bm so the row grid keeps >= ~_MIN_GRID_STEPS steps (DMA/compute
        # overlap + both v7x TensorCores get work).
        bm = min(bm, max(row_align, pl.cdiv(M, _MIN_GRID_STEPS)))
        bm = max(row_align, (bm // row_align) * row_align)
        return bm, N

    # Very wide feature axis: 2-D tiling with fat row blocks (amortize per-step
    # overhead and bias re-fetch) and a lane-dense, 128-multiple column tile.
    bm = max(row_align, (min(M, 256) // row_align) * row_align)
    bn = (_VMEM_TILE_BUDGET // (bm * per_elem)) // 128 * 128
    while bn < 128 and bm > row_align:
        bm = max(row_align, ((bm // 2) // row_align) * row_align)
        bn = (_VMEM_TILE_BUDGET // (bm * per_elem)) // 128 * 128
    bn = max(128, bn)
    bn = min(bn, N)
    return bm, bn


def _make_tpu_kernel(*, threshold, scale, activation, use_bias, two_d):
    """Kernel using the on-chip PRNG (Mosaic / real TPU only)."""

    def kernel(seed_ref, x_ref, *rest):
        if use_bias:
            b_ref, o_ref = rest
        else:
            (o_ref,) = rest

        # f32-internal compute regardless of I/O dtype: free for an HBM-bound
        # kernel, avoids v5e's emulated bf16 VPU/EUP path, and matches the
        # fp32-internal accuracy of the Triton reference.
        x = x_ref[...].astype(jnp.float32)
        if use_bias:
            x = x + b_ref[...].astype(jnp.float32)
        x = _apply_activation(x, activation)

        if threshold is not None:
            if two_d:
                step = pl.program_id(0) * pl.num_programs(1) + pl.program_id(1)
            else:
                step = pl.program_id(0)
            # One reseed per (large) block; mix the block index with a large odd
            # multiplier so per-block streams are decorrelated.
            pltpu.prng_seed(seed_ref[0] ^ (step * _SEED_MIX))
            bits = pltpu.bitcast(pltpu.prng_random_bits(x.shape), jnp.uint32)
            keep = bits > jnp.uint32(threshold)          # keep iff uniform > p
            x = jnp.where(keep, x * scale, 0.0)

        o_ref[...] = x.astype(o_ref.dtype)

    return kernel


def _make_bits_kernel(*, threshold, scale, activation, use_bias):
    """Fallback kernel: random bits precomputed on host and streamed as an input
    (used only when the default backend is not a real TPU)."""

    def kernel(*refs):
        idx = 0
        x_ref = refs[idx]; idx += 1
        bits_ref = None
        if threshold is not None:
            bits_ref = refs[idx]; idx += 1
        b_ref = None
        if use_bias:
            b_ref = refs[idx]; idx += 1
        o_ref = refs[idx]

        x = x_ref[...].astype(jnp.float32)
        if use_bias:
            x = x + b_ref[...].astype(jnp.float32)
        x = _apply_activation(x, activation)

        if threshold is not None:
            keep = bits_ref[...] > jnp.uint32(threshold)
            x = jnp.where(keep, x * scale, 0.0)

        o_ref[...] = x.astype(o_ref.dtype)

    return kernel


def fused_dropout_bias(x, bias, *, p, activation="gelu", training=True, seed=0):
    """JAX/Pallas equivalent of FusedDropoutBias.forward (forward pass only)."""
    orig_shape = x.shape
    N = x.shape[-1]
    x2 = x.reshape(-1, N)
    M = x2.shape[0]

    p_eff = float(p) if training else 0.0
    assert 0.0 <= p_eff < 1.0
    dropout = p_eff > 0.0
    # 32-bit integer dropout threshold, precomputed at trace time.
    # (keep prob differs from 1-p by <= 2^-32 — negligible.)
    threshold = min(int(p_eff * (1 << 32)), (1 << 32) - 1) if dropout else None
    scale = 1.0 / (1.0 - p_eff) if dropout else 1.0

    use_bias = bias is not None
    if use_bias:
        assert bias.shape == (N,)
        bias2 = bias.reshape(1, N).astype(x.dtype)

    io_bytes = jnp.dtype(x.dtype).itemsize
    on_tpu = jax.devices()[0].platform == "tpu"
    use_hw_prng = on_tpu  # pltpu.prng_* has no lowering off-TPU

    bm, bn = _choose_tiles(M, N, io_bytes, dropout)

    if bn == N:
        grid = (pl.cdiv(M, bm),)
        two_d = False
        xmap = lambda i, *_: (i, 0)
        bmap = lambda i, *_: (0, 0)
        dims = ("parallel",)
    else:
        grid = (pl.cdiv(M, bm), pl.cdiv(N, bn))
        two_d = True
        xmap = lambda i, j, *_: (i, j)
        bmap = lambda i, j, *_: (0, j)
        # No accumulation — every output block is disjoint — so both axes are
        # legally parallel (lets v7x shard even when the row axis is short).
        dims = ("parallel", "parallel")

    x_spec = pl.BlockSpec((bm, bn), xmap)
    b_spec = pl.BlockSpec((1, bn), bmap)
    o_spec = pl.BlockSpec((bm, bn), xmap)

    flops = M * N * ((12 if activation == "gelu" else 1) + (2 if dropout else 0))
    cost = pl.CostEstimate(
        flops=int(flops),
        transcendentals=int(M * N) if activation == "gelu" else 0,
        bytes_accessed=int(M * N * io_bytes * 2
                           + (N * io_bytes if use_bias else 0)
                           + (M * N * 4 if (dropout and not use_hw_prng) else 0)),
    )
    cparams = pltpu.CompilerParams(dimension_semantics=dims,
                                   vmem_limit_bytes=_VMEM_LIMIT_BYTES)
    out_shape = jax.ShapeDtypeStruct((M, N), x.dtype)

    if use_hw_prng:
        kernel = _make_tpu_kernel(threshold=threshold, scale=scale,
                                  activation=activation, use_bias=use_bias,
                                  two_d=two_d)
        seeds = jnp.asarray([seed], dtype=jnp.int32)
        in_specs = [x_spec] + ([b_spec] if use_bias else [])
        args = (seeds, x2) + ((bias2,) if use_bias else ())
        out = pl.pallas_call(
            kernel,
            out_shape=out_shape,
            grid_spec=pltpu.PrefetchScalarGridSpec(
                num_scalar_prefetch=1, grid=grid,
                in_specs=in_specs, out_specs=o_spec),
            compiler_params=cparams,
            cost_estimate=cost,
        )(*args)
    else:
        # Off-TPU fallback: generate the uniform u32 bits with jax.random and
        # stream them through the same tiling.  NOTE: mask differs from the
        # HW-PRNG path for the same seed (not reproducible across backends).
        kernel = _make_bits_kernel(threshold=threshold, scale=scale,
                                   activation=activation, use_bias=use_bias)
        in_specs = [x_spec]
        args = [x2]
        if dropout:
            bits = jax.random.bits(jax.random.PRNGKey(seed), (M, N),
                                   dtype=jnp.uint32)
            in_specs.append(pl.BlockSpec((bm, bn), xmap))
            args.append(bits)
        if use_bias:
            in_specs.append(b_spec)
            args.append(bias2)
        out = pl.pallas_call(
            kernel,
            out_shape=out_shape,
            grid_spec=pltpu.PrefetchScalarGridSpec(
                num_scalar_prefetch=0, grid=grid,
                in_specs=in_specs, out_specs=o_spec),
            compiler_params=cparams,
            cost_estimate=cost,
        )(*args)

    return out.reshape(orig_shape)


# TODO(synk): backward pass (_dropout.backward / trainable-bias grad) is not
# translated; only the module's forward semantics are implemented here.

if __name__ == "__main__":
    key = jax.random.PRNGKey(0)

    # small shapes consistent with the module: (batch=2, seq=8, hidden=128)
    B, S, H = 2, 8, 128
    x = jax.random.normal(key, (B, S, H), dtype=jnp.float32)

    # module __init__: bias = torch.zeros(bias_shape) -> deterministic zeros init
    bias = jnp.zeros((H,), dtype=jnp.float32)
    p = 0.1

    # training-mode run (dropout active)
    y_train = fused_dropout_bias(x, bias, p=p, activation="gelu",
                                 training=True, seed=0)
    jax.block_until_ready(y_train)

    # eval-mode run (p -> 0, deterministic) checked against pure-JAX reference
    y_eval = fused_dropout_bias(x, bias, p=p, activation="gelu", training=False)
    ref_eval = _gelu(x + bias.reshape(1, 1, H))
    assert y_eval.shape == x.shape and y_train.shape == x.shape
    assert jnp.allclose(y_eval, ref_eval, atol=1e-5, rtol=1e-5)

    # bias=None specialization (no bias stream / add inside the kernel)
    y_nobias = fused_dropout_bias(x, None, p=p, activation="gelu", training=False)
    assert jnp.allclose(y_nobias, _gelu(x), atol=1e-5, rtol=1e-5)

    # sanity on dropout: outputs are either 0 or scaled activation values
    scaled = ref_eval / (1.0 - p)
    is_zero = jnp.isclose(y_train, 0.0, atol=1e-6)
    is_scaled = jnp.isclose(y_train, scaled, atol=1e-4, rtol=1e-4)
    assert bool(jnp.all(is_zero | is_scaled))

    print("KERNEL_OK")
</pallas_src>

<mosaic_0001>
module attributes {stable_mosaic.version = 11 : i64} {
  func.func @kernel(%arg0: i32, %arg1: memref<8x128xf32, #tpu.memory_space<vmem>>, %arg2: memref<8x128xi32, #tpu.memory_space<vmem>>, %arg3: memref<1x128xf32, #tpu.memory_space<vmem>>, %arg4: memref<8x128xf32, #tpu.memory_space<vmem>>) attributes {dimension_semantics = [#tpu.dimension_semantics<parallel>], iteration_bounds = array<i64: 2>, scalar_prefetch = 0 : i64, scratch_operands = 0 : i64, tpu.core_type = #tpu.core_type<tc>, window_params = [{transform_indices = @transform_0, window_bounds = array<i64: 8, 128>}, {transform_indices = @transform_1, window_bounds = array<i64: 8, 128>}, {pipeline_mode = #tpu.pipeline_mode<synchronous>, transform_indices = @transform_2, window_bounds = array<i64: 1, 128>}, {transform_indices = @transform_3, window_bounds = array<i64: 8, 128>}]} {
    %c0 = arith.constant 0 : index
    %c0_0 = arith.constant 0 : index
    %0 = vector.load %arg1[%c0, %c0_0] : memref<8x128xf32, #tpu.memory_space<vmem>>, vector<8x128xf32>
    %c0_1 = arith.constant 0 : index
    %c0_2 = arith.constant 0 : index
    %1 = vector.load %arg3[%c0_1, %c0_2] : memref<1x128xf32, #tpu.memory_space<vmem>>, vector<1x128xf32>
    %2 = vector.broadcast %1 : vector<1x128xf32> to vector<8x128xf32>
    %3 = arith.addf %0, %2 : vector<8x128xf32>
    %cst = arith.constant 5.000000e-01 : f32
    %4 = vector.broadcast %cst : f32 to vector<8x128xf32>
    %5 = arith.mulf %4, %3 : vector<8x128xf32>
    %cst_3 = arith.constant 4.471500e-02 : f32
    %6 = vector.broadcast %cst_3 : f32 to vector<8x128xf32>
    %7 = arith.mulf %6, %3 : vector<8x128xf32>
    %8 = arith.mulf %7, %3 : vector<8x128xf32>
    %9 = arith.mulf %8, %3 : vector<8x128xf32>
    %10 = arith.addf %3, %9 : vector<8x128xf32>
    %cst_4 = arith.constant 0.797884583 : f32
    %11 = vector.broadcast %cst_4 : f32 to vector<8x128xf32>
    %12 = arith.mulf %11, %10 : vector<8x128xf32>
    %13 = math.tanh %12 : vector<8x128xf32>
    %cst_5 = arith.constant 1.000000e+00 : f32
    %14 = vector.broadcast %cst_5 : f32 to vector<8x128xf32>
    %15 = arith.addf %14, %13 : vector<8x128xf32>
    %16 = arith.mulf %5, %15 : vector<8x128xf32>
    %c0_6 = arith.constant 0 : index
    %c0_7 = arith.constant 0 : index
    %17 = vector.load %arg2[%c0_6, %c0_7] : memref<8x128xi32, #tpu.memory_space<vmem>>, vector<8x128xi32>
    %c429496729_i32 = arith.constant 429496729 : i32
    %18 = vector.broadcast %c429496729_i32 : i32 to vector<8x128xi32>
    %19 = arith.cmpi ugt, %17, %18 : vector<8x128xi32>
    %cst_8 = arith.constant 1.11111116 : f32
    %20 = vector.broadcast %cst_8 : f32 to vector<8x128xf32>
    %21 = arith.mulf %16, %20 : vector<8x128xf32>
    %cst_9 = arith.constant 0.000000e+00 : f32
    %22 = vector.broadcast %cst_9 : f32 to vector<8x128xf32>
    %23 = arith.select %19, %21, %22 : vector<8x128xi1>, vector<8x128xf32>
    %c0_10 = arith.constant 0 : index
    %c0_11 = arith.constant 0 : index
    %24 = vector.load %arg4[%c0_10, %c0_11] : memref<8x128xf32, #tpu.memory_space<vmem>>, vector<8x128xf32>
    tpu.vector_store %arg4[%c0_10, %c0_11], %23 {strides = array<i32>} : memref<8x128xf32, #tpu.memory_space<vmem>>, vector<8x128xf32>,
    return
  }
  func.func @transform_0(%arg0: i32) -> (i32, i32) {
    %c0_i32 = arith.constant 0 : i32
    %c0_i32_0 = arith.constant 0 : i32
    return %arg0, %c0_i32 : i32, i32
  }
  func.func @transform_1(%arg0: i32) -> (i32, i32) {
    %c0_i32 = arith.constant 0 : i32
    %c0_i32_0 = arith.constant 0 : i32
    return %arg0, %c0_i32 : i32, i32
  }
  func.func @transform_2(%arg0: i32) -> (i32, i32) {
    %c0_i32 = arith.constant 0 : i32
    %c0_i32_0 = arith.constant 0 : i32
    %c0_i32_1 = arith.constant 0 : i32
    return %c0_i32, %c0_i32_0 : i32, i32
  }
  func.func @transform_3(%arg0: i32) -> (i32, i32) {
    %c0_i32 = arith.constant 0 : i32
    %c0_i32_0 = arith.constant 0 : i32
    return %arg0, %c0_i32 : i32, i32
  }
}

</mosaic_0001>

<bundles_post_ra>
// kernel: tpu_custom_call.1
= control target key start
LH: loop header
LB: loop body
LE: loop exit
PB: predicated region body
PF: predicated region fallthrough
CT: control target
= control target key end

     0   :  { %8 = vsyncpa [#allocation3], 0  ;;  %s779_s0 = inlined_call_operand.hbm [shape: f32[16,128], index: 0, kind: input, shape index: {}]   ;;  %s780_s1 = inlined_call_operand.hbm [shape: u32[16,128], index: 1, kind: input, shape index: {}]   ;;  %s781_s2 = inlined_call_operand.vmem [shape: f32[1,128], index: 2, kind: input, shape index: {}]   ;;  %s782_s3 = inlined_call_operand.hbm [shape: f32[16,128], index: 3, kind: output, shape index: {}]  }
   0x1   :  { %10 = vsyncpa [#allocation3 + $0x1], 0 }
   0x2   :  { %11 = vsyncpa [#allocation6], 0 }
   0x3   :  { %13 = vsyncpa [#allocation6 + $0x1], 0 }
   0x4   :  { %14 = vsyncpa [#allocation4], 0 }
   0x5   :  { %16 = vsyncpa [#allocation4 + $0x1], 0  ;;  %s571_s12 = smov 0   ;;  %s573_s13 = smov 0  }
   0x6   :  { %s575_s14 = smov 0   ;;  %s577_s15 = smov 0  }
   0x7 LB: > { %s592_s16 = sadd.s32 4294967295, %s546_s15   ;;  %s353_s17 = sadd.s32 4294967294, %s546_s15   ;;  %s546_s15 = sphi %s577_s15, %s801_s15   ;;  %s542_s14 = sphi %s575_s14, %s800_s14   ;;  %s538_s13 = sphi %s573_s13, %s799_s13   ;;  %s534_s12 = sphi %s571_s12, %s798_s12  }
   0x8   : > { %s596_s18 = sadd.s32 1, %s546_s15   ;;  %s29_s19 = sadd.s32 1, %s542_s14 }
   0x9   : > { %s26_s20 = ssub.s32 %s546_s15, %s596_s18  ;;  %p36_p0 = scmp.ne.s32.totalorder %s542_s14, %s538_s13 }
   0xa   : > { %p27_p1 = scmp.eq.s32.totalorder %s26_s20, 0  ;;  %p37_p2 = scmp.eq.s32.totalorder %s546_s15, 0 }
   0xb   : > { %p42_p3 = scmp.ne.s32.totalorder %s538_s13, %s534_s12  ;;  %p43_p4 = scmp.eq.s32.totalorder %s592_s16, 0 }
   0xc   : > { %s608_s21 = scalar_select %p27_p1, %s542_s14, %s29_s19  }
   0xd   : > { %p610_p5 = por %p37_p2, %p36_p0  ;;  %p614_p6 = por %p43_p4, %p42_p3 }
   0xe   : > { %p113_p7 = scmp.eq.s32.totalorder %s592_s16, 1  ;;  %p119_p8 = scmp.eq.s32.totalorder %s353_s17, 1 }
   0xf   : > { %s786_s23 = scalar_select %p614_p6, 1, 0 }
  0x10   : > { %p386_p10 = scmp.lt.s32.totalorder %s546_s15, 2  ;;  %p621_p11 = por %p113_p7, %p36_p0 }
  0x11   : > { %p625_p12 = por %p119_p8, %p42_p3  ;;  %s630_s26 = sand.u32 1, %s542_s14  }
  0x12   : > { %s787_s24 = scalar_select %p621_p11, 1, 0 }
  0x13   : > { %s788_s25 = scalar_select %p625_p12, 1, 0 }
  0x14   : > { %s357_s27 = sshll.u32 %s546_s15, 7  ;;  %s356_s28 = sshll.u32 %s630_s26, 3 }
  0x15   : > { %s639_s4 = scalar_lea.hbm %s779_s0, %s357_s27  ;;  %s146_s5 = scalar_lea.vmem [#allocation2], %s356_s28 }
  0x16   : > { %s153_s6 = sshll.u32 %s146_s5, 4  ;;  %p645_p13 = pnand %p386_p10, %p610_p5  ;;  %s649_s6 = int_to_ptr.vmem [resolvable:$true] %s153_s6 }
  0x17   : > { %s143_s8 = scalar_lea.sflag [#allocation3], %s630_s26  ;;  %s422_s9 = scalar_lea.hbm %s639_s4, 128 }
  0x18   : > { %p423_p2 = scmp.ne.s32.totalorder %s639_s4, %s422_s9  ;;  %p424_p3 = pneg %p645_p13 }
  0x19   : > { %s427_s17 = scalar_lea.hbm %s779_s0, 256  ;;  %p428_p5 = scmp.lt.s32.totalorder %s639_s4, %s779_s0 }
  0x1a   : > { %p425_p4 = pnand %p424_p3, %p423_p2  ;;  %p429_p8 = scmp.lt.s32.totalorder %s427_s17, %s422_s9 }
  0x1c   : > { %p426_p7 = pneg %p425_p4  ;;  %p430_p10 = por %p429_p8, %p428_p5 }
  0x1e   : > { %p431_p9 = pnand %p430_p10, %p426_p7 }
  0x20   : > { %434 = shalt.err (!%p431_p9)
}
  0x21   : > { %s435_s22 = scalar_lea.vmem %s649_s6, 128  ;;  %s548_s29 = smov [#allocation2]  }
  0x22   : > { %p436_p0 = scmp.ne.s32.totalorder %s649_s6, %s435_s22  ;;  %s440_s30 = sshll.u32 %s548_s29, 4  ;;  %s441_s30 = int_to_ptr.vmem [resolvable:$false] %s440_s30 }
  0x23   : > { %s442_s5 = scalar_lea.vmem %s441_s30, 256  ;;  %p443_p1 = scmp.lt.s32.totalorder %s649_s6, %s441_s30 }
  0x24   : > { %p438_p2 = pnand %p436_p0, %p424_p3  ;;  %p444_p12 = scmp.lt.s32.totalorder %s442_s5, %s435_s22 }
  0x26   : > { %p439_p4 = pneg %p438_p2  ;;  %p445_p11 = por %p444_p12, %p443_p1 }
  0x28   : > { %p446_p5 = pnand %p445_p11, %p439_p4 }
  0x2a   : > { %449 = shalt.err (!%p446_p5)
}
  0x2b   : > { %378 = dma.hbm_to_vmem [thread:$0]  (!%p645_p13), %s639_s4, 128, %s649_s6, %s143_s8  }
  0x2c   : > { %p790_p9 = scmp.lt.s32.totalorder %s546_s15, 3  ;;  %p791_p0 = scmp.ge.s32.totalorder %s546_s15, 1 }
  0x2d   : > { %s691_s17 = scalar_lea.hbm %s780_s1, %s357_s27  ;;  %s164_s19 = scalar_lea.vmem [#allocation5], %s356_s28 }
  0x2e   : > { %p682_p7 = pnand %p791_p0, %p790_p9  ;;  %s171_s20 = sshll.u32 %s164_s19, 4  ;;  %s172_s20 = int_to_ptr.vmem [resolvable:$true] %s171_s20 }
  0x2f   : > { %s161_s4 = scalar_lea.sflag [#allocation6], %s630_s26  ;;  %s450_s6 = scalar_lea.hbm %s691_s17, 128 }
  0x30   : > { %s792_s9 = scalar_select %p682_p7, 1, 0 }
  0x31   : > { %p451_p11 = scmp.ne.s32.totalorder %s691_s17, %s450_s6  ;;  %s455_s29 = scalar_lea.hbm %s780_s1, 256 }
  0x32   : > { %p456_p8 = scmp.lt.s32.totalorder %s691_s17, %s780_s1  ;;  %p457_p10 = scmp.lt.s32.totalorder %s455_s29, %s450_s6 }
  0x33   : > { %p453_p12 = pnand %p451_p11, %p424_p3 }
  0x34   : > { %p458_p2 = por %p457_p10, %p456_p8 }
  0x35   : > { %p454_p1 = pneg %p453_p12 }
  0x37   : > { %p459_p4 = pnand %p458_p2, %p454_p1 }
  0x39   : > { %462 = shalt.err (!%p459_p4)
}
  0x3a   : > { %s463_s28 = scalar_lea.vmem %s172_s20, 128  ;;  %s549_s26 = smov [#allocation5]  }
  0x3b   : > { %p464_p5 = scmp.ne.s32.totalorder %s172_s20, %s463_s28  ;;  %s468_s5 = sshll.u32 %s549_s26, 4  ;;  %s469_s5 = int_to_ptr.vmem [resolvable:$false] %s468_s5 }
  0x3c   : > { %s470_s10 = scalar_lea.vmem %s469_s5, 256  ;;  %p471_p11 = scmp.lt.s32.totalorder %s172_s20, %s469_s5 }
  0x3d   : > { %p466_p9 = pnand %p464_p5, %p424_p3  ;;  %p472_p12 = scmp.lt.s32.totalorder %s470_s10, %s463_s28 }
  0x3f   : > { %p467_p0 = pneg %p466_p9  ;;  %p473_p6 = por %p472_p12, %p471_p11 }
  0x41   : > { %p474_p7 = pnand %p473_p6, %p467_p0 }
  0x43   : > { %477 = shalt.err (!%p474_p7)
}
  0x44   : > { %381 = dma.hbm_to_vmem [thread:$0]  (!%p645_p13), %s691_s17, 128, %s172_s20, %s161_s4  }
  0x45   : > { %p793_p1 = scmp.ne.s32.totalorder %s792_s9, 0 }
  0x46   : > { %s717_s11 = sand.u32 (!%p793_p1), 1, %s538_s13   ;;  %p794_p6 = scmp.ne.s32.totalorder (!%p793_p1), %s786_s23, 0 }
  0x47   : > { %180 = sbr.rel (%p793_p1) target bundleno = 127 (0x7f), region = 32  ;;  %s720_s19 = sshll.u32 (!%p793_p1), %s717_s11, 3 }
  0x48   : > { %s183_s6 = scalar_lea.sflag (!%p793_p1), [#allocation3], %s717_s11  ;;  %s186_s8 = scalar_lea.vmem (!%p793_p1), [#allocation2], %s720_s19 }
  0x4c   : > { %521 = dma.done.wait (%p794_p6), %s183_s6, 128  }
  0x4d   : > { %523 = vsyncadd (%p794_p6), %s183_s6, 4294967168  ;;  %s192_s7 = scalar_lea.sflag [#allocation6], %s717_s11  ;;  %s195_s9 = scalar_lea.vmem [#allocation5], %s720_s19 }
  0x4e   : > { %525 = dma.done.wait (%p794_p6), %s192_s7, 128  }
  0x4f   : > { %527 = vsyncadd (%p794_p6), %s192_s7, 4294967168  ;;  %v223_v0 = vld [vmem:[%s186_s8] sm:$0xff]  ;;  %v241_v11 = vld [vmem:[%s195_s9] sm:$0xff]  ;;  %s222_s23 = scalar_lea.vmem [#allocation7], %s720_s19  ;;  %s366_s22 = sshll.u32 %s592_s16, 7 }
  0x50   : > { %v364_v1 = vld [vmem:[%s781_s2] ss:$0 sm:$0xff]  ;;  %s260_s4 = sshll.u32 %s222_s23, 4  ;;  %vm242_vm0 = vcmp.gt.u32.totalorder %v241_v11, 429496729  ;;  %s258_s30 = scalar_lea.hbm %s782_s3, %s366_s22  ;;  %s739_s4 = int_to_ptr.vmem [resolvable:$true] %s260_s4 }
  0x51   : > { %v231_v2 = vadd.f32 %v364_v1, %v223_v0  ;;  %s247_s28 = scalar_lea.sflag [#allocation4], %s717_s11  ;;  %s478_s26 = scalar_lea.vmem %s739_s4, 128 }
  0x52   : > { %p479_p13 = scmp.ne.s32.totalorder %s739_s4, %s478_s26  ;;  %p795_p3 = scmp.ne.s32.totalorder %s787_s24, 0 }
  0x53   : > { %v233_v3 = vmul.f32 0.044715, %v231_v2  ;;  %v232_v8 = vmul.f32 0.5, %v231_v2  ;;  %s550_s16 = smov [#allocation7]  }
  0x54   : > { %p480_p7 = pnand %p479_p13, %p795_p3  ;;  %s482_s5 = sshll.u32 %s550_s16, 4  ;;  %s483_s5 = int_to_ptr.vmem [resolvable:$false] %s482_s5 }
  0x55   : > { %v234_v4 = vmul.f32 %v233_v3, %v231_v2  ;;  %s484_s10 = scalar_lea.vmem %s483_s5, 256  ;;  %p485_p10 = scmp.lt.s32.totalorder %s739_s4, %s483_s5 }
  0x56   : > { %p481_p8 = pneg %p480_p7  ;;  %p486_p2 = scmp.lt.s32.totalorder %s484_s10, %s478_s26 }
  0x57   : > { %v235_v5 = vmul.f32 %v234_v4, %v231_v2 }
  0x58   : > { %p487_p4 = por %p486_p2, %p485_p10 }
  0x59   : > { %v236_v6 = vadd.f32 %v235_v5, %v231_v2 }
  0x5a   : > { %p488_p5 = pnand %p487_p4, %p481_p8 }
  0x5b   : > { %v237_v7 = vmul.f32 0.7978846, %v236_v6 }
  0x5d   : > { %420 = vtanh.f32 %v237_v7 }
  0x6a   : > { %v421_v9 = vpop.eup %420 }
  0x6b   : > { %v239_v10 = vadd.f32 1.0, %v421_v9 }
  0x6d   : > { %v240_v12 = vmul.f32 %v239_v10, %v232_v8 }
  0x6f   : > { %v243_v13 = vmul.f32 1.1111112, %v240_v12 }
  0x71   : > { %v244_v14 = vsel %vm242_vm0, %v243_v13, 0.0 }
  0x72   : > { %245 = vst [vmem:[%s222_s23] sm:$0xff] %v244_v14 }
  0x73   : > { %491 = shalt.err (!%p488_p5)
}
  0x74   : > { %s492_s19 = scalar_lea.hbm %s258_s30, 128  ;;  %s496_s8 = scalar_lea.hbm %s782_s3, 256 }
  0x75   : > { %p493_p9 = scmp.ne.s32.totalorder %s258_s30, %s492_s19  ;;  %p497_p12 = scmp.lt.s32.totalorder %s258_s30, %s782_s3 }
  0x76   : > { %p498_p1 = scmp.lt.s32.totalorder %s496_s8, %s492_s19 }
  0x77   : > { %p494_p0 = pnand %p493_p9, %p795_p3 }
  0x78   : > { %p499_p6 = por %p498_p1, %p497_p12 }
  0x79   : > { %p495_p11 = pneg %p494_p0 }
  0x7b   : > { %p500_p13 = pnand %p499_p6, %p495_p11 }
  0x7d   : > { %503 = shalt.err (!%p500_p13)
}
  0x7e   : > { %373 = dma.vmem_to_hbm [thread:$0]  (%p795_p3), %s739_s4, 128, %s258_s30, %s247_s28  }
  0x7f PF: > { %s272_s17 = sand.u32 1, %s534_s12   ;;  %p796_p7 = scmp.ne.s32.totalorder %s788_s25, 0 }
  0x80   : > { %p797_p8 = scmp.ge.s32.totalorder %s546_s15, 2  ;;  %s273_s20 = scalar_lea.sflag [#allocation4], %s272_s17 }
  0x82   : > { %p383_p10 = pnand %p797_p8, %p796_p7 }
  0x84   : > { %p384_p2 = pneg %p383_p10 }
  0x86   : > { %529 = dma.done.wait (%p384_p2), %s273_s20, 128  }
  0x87   : > { %531 = vsyncadd (%p384_p2), %s273_s20, 4294967168  ;;  %p19_p4 = scmp.ge.s32.totalorder %s596_s18, 4   ;;  %s798_s12 = smov %s538_s13 }
  0x88   : > { %s799_s13 = smov %s542_s14  ;;  %s800_s14 = smov %s608_s21 }
  0x89   : > { %s801_s15 = smov %s596_s18  ;;  %21 = sbr.rel (!%p19_p4) target bundleno = 7 (0x7), region = 90 }
  0x8e   :  { %278 = vsyncpa [#allocation3], 1 }
  0x8f   :  { %280 = vsyncpa [#allocation3 + $0x1], 1 }
  0x90   :  { %281 = vsyncpa [#allocation6], 1 }
  0x91   :  { %283 = vsyncpa [#allocation6 + $0x1], 1 }
  0x92   :  { %284 = vsyncpa [#allocation4], 1 }
  0x93   :  { %286 = vsyncpa [#allocation4 + $0x1], 1 }

</bundles_post_ra>
